<compile_context>
chip_gen: v7x
topology: tpu7x:2x2x1
jax: 0.10.0
libtpu: 0.0.40
codegen_flags: <defaults>
</compile_context>

<pallas_src>
import math

import jax
import jax.numpy as jnp
import numpy as np
from jax.experimental import pallas as pl
from jax.experimental.pallas import tpu as pltpu


# ---------------------------------------------------------------------------
# Host-side constant builders (numpy -> compile-time constants under jit).
# ---------------------------------------------------------------------------
def _pool_matrix_np(h, w, wo):
    """(h*w, (h//2)*wo) 0/0.25 matrix so that act(C, h*w) @ P == AvgPool2d(2)
    over the valid 2D grid, with output row stride `wo`."""
    hw, q = h * w, (h // 2) * wo
    rp = np.arange(hw)[:, None]
    cq = np.arange(q)[None, :]
    cond = (((rp // w) // 2) == (cq // wo)) & (((rp % w) // 2) == (cq % wo))
    return np.where(cond, 0.25, 0.0).astype(np.float32)


def _conv_shift_masks_np(h, w, w_valid):
    """(9, h*w) 0/1 boundary masks for the 9 offsets of a 3x3 / pad 1 conv on
    a lane-dense (C, h*w) map whose valid window is h x w_valid."""
    p = np.arange(h * w)
    y, x = p // w, p % w
    out = np.zeros((9, h * w), np.float32)
    for ki in range(3):
        for kj in range(3):
            di, dj = ki - 1, kj - 1
            ok = np.ones(h * w, bool)
            if di > 0:
                ok &= y < h - di
            if di < 0:
                ok &= y >= -di
            if dj > 0:
                ok &= x < w_valid - dj
            if dj < 0:
                ok &= x >= -dj
            if w_valid < w:
                ok &= x < w_valid
            out[ki * 3 + kj] = ok.astype(np.float32)
    return out


def _host_constants():
    pf1 = _pool_matrix_np(16, 16, 16)                       # (256, 128)
    # pool2 replicated to every 16-lane block: (a3 @ pf2)[c, l] = pooled[c, l%16]
    pf2 = np.tile(_pool_matrix_np(8, 16, 4), (1, 8))        # (128, 128)
    # block-diagonal channel selector for the CHW flatten: msel[c, l] = (l//16 == c)
    msel = (np.arange(128)[None, :] // 16 == np.arange(8)[:, None]).astype(np.float32)
    m2 = _conv_shift_masks_np(16, 16, 16)                   # (9, 256)
    m3 = _conv_shift_masks_np(8, 16, 8)                     # (9, 128)
    return pf1, pf2, msel, m2, m3


# ---------------------------------------------------------------------------
# The fused Pallas kernel (one grid step == one frame)
# ---------------------------------------------------------------------------
def _proxy_ann_kernel(x1t_ref, w1_ref, w2_ref, w3_ref, w4t_ref, w5t_ref,
                      pf1_ref, pf2_ref, msel_ref, m2_ref, m3_ref, out_ref):
    f32, bf16 = jnp.float32, jnp.bfloat16

    def conv3x3(act, w_ref, mask_ref, w, hw):
        # 3x3 / stride 1 / pad 1 on a lane-dense (C, hw) map as ONE matmul:
        # 9 shifted copies (XLU roll + precomputed boundary mask) concatenated
        # along the contraction axis -> K = 9*C, single MXU issue.
        pieces = []
        for ki in range(3):
            for kj in range(3):
                d = (ki - 1) * w + (kj - 1)
                s = act if d == 0 else pltpu.roll(act, shift=(-d) % hw, axis=1)
                if d != 0:
                    o = ki * 3 + kj
                    s = s * mask_ref[o:o + 1, :]        # sublane-broadcast 0/1
                pieces.append(s.astype(bf16))
            # (pieces stay f32 until the final cast above; masks are f32)
        stacked = jnp.concatenate(pieces, axis=0)       # (9*C, hw) bf16
        return jnp.dot(w_ref[...], stacked, preferred_element_type=f32)

    # conv1 (5x5 / s2 / p1), im2col'd on the host: (16,50)@(50,256)
    a1 = jnp.maximum(jnp.dot(w1_ref[...], x1t_ref[0],
                             preferred_element_type=f32), 0.0)         # (16,256)

    # conv2 (3x3 / s1 / p1): one K=144 matmul
    a2 = jnp.maximum(conv3x3(a1, w2_ref, m2_ref, 16, 256), 0.0)        # (16,256)

    # AvgPool2d(2): 16x16 -> 8x8, kept 128 lanes wide (cols x>=8 are zero)
    p1 = jnp.dot(a2.astype(bf16), pf1_ref[...],
                 preferred_element_type=f32)                            # (16,128)

    # conv3 (3x3 / s1 / p1): one K=144 matmul
    a3 = jnp.maximum(conv3x3(p1, w3_ref, m3_ref, 16, 128), 0.0)        # (8,128)

    # AvgPool2d(2) + CHW flatten: pooled values replicated to every 16-lane
    # block, channel-selected and sublane-summed -> lane-dense (1,128) input.
    t = jnp.dot(a3.astype(bf16), pf2_ref[...],
                preferred_element_type=f32)                             # (8,128)
    fc1_in = jnp.sum(t * msel_ref[...], axis=0, keepdims=True)          # (1,128)

    # fc1 / fc2 (fc2 output dim pre-padded to 128 lanes on the host) + ReLUs
    y1 = jnp.maximum(jnp.dot(fc1_in.astype(bf16), w4t_ref[...],
                             preferred_element_type=f32), 0.0)          # (1,256)
    y2 = jnp.maximum(jnp.dot(y1.astype(bf16), w5t_ref[...],
                             preferred_element_type=f32), 0.0)          # (1,128)

    # Five ReLU forward-hook sums: sublane partials, two lane reduces at end.
    s256 = jnp.sum(a1 + a2, axis=0, keepdims=True) + y1                 # (1,256)
    s128 = jnp.sum(a3, axis=0, keepdims=True) + y2                      # (1,128)
    total = (jnp.sum(s256, axis=1, keepdims=True)
             + jnp.sum(s128, axis=1, keepdims=True))                    # (1,1)

    # Lane-dense packed output: lanes 0..9 = ann_output, lane 127 = hook sum.
    lane = jax.lax.broadcasted_iota(jnp.int32, (1, 128), 1)
    out_ref[0] = y2 + (lane == 127).astype(f32) * total


# ---------------------------------------------------------------------------
# Wrapper
# ---------------------------------------------------------------------------
def _conv1_im2col(frame):
    """frame (2, 34, 34) -> X1^T (50, 256): row = ci*25 + ki*5 + kj,
    col = y*16 + x, value = zero-padded input[ci, 2y+ki, 2x+kj]."""
    xp = jnp.pad(frame, ((0, 0), (1, 1), (1, 1)))            # (2, 36, 36)
    patches = [xp[:, ki:ki + 31:2, kj:kj + 31:2]             # 25 x (2, 16, 16)
               for ki in range(5) for kj in range(5)]
    return jnp.stack(patches, axis=1).reshape(2 * 25, 16 * 16)


def proxy_ann_forward(frames, params):
    """frames: (B, 2, 34, 34) f32 -> (ann_output (B, 10), ann_activation (B,))."""
    bf16, f32 = jnp.bfloat16, jnp.float32
    b = frames.shape[0]

    x1t = jax.vmap(_conv1_im2col)(frames).astype(bf16)                 # (B,50,256)
    w1 = params["conv1"].reshape(16, 50).astype(bf16)                  # (16,50)
    w2 = params["conv2"].transpose(0, 2, 3, 1).reshape(16, 144).astype(bf16)
    w3 = params["conv3"].transpose(0, 2, 3, 1).reshape(8, 144).astype(bf16)
    w4t = params["fc1"].T.astype(bf16)                                 # (128,256)
    w5t = jnp.pad(params["fc2"].T, ((0, 0), (0, 118))).astype(bf16)    # (256,128)

    pf1, pf2, msel, m2, m3 = _host_constants()
    pf1 = jnp.asarray(pf1, bf16)
    pf2 = jnp.asarray(pf2, bf16)
    msel = jnp.asarray(msel, f32)
    m2 = jnp.asarray(m2, f32)
    m3 = jnp.asarray(m3, f32)

    def full2d(shape):
        return pl.BlockSpec(shape, lambda i: (0, 0))

    out = pl.pallas_call(
        _proxy_ann_kernel,
        out_shape=jax.ShapeDtypeStruct((b, 1, 128), f32),
        grid=(b,),
        in_specs=[
            pl.BlockSpec((1, 50, 256), lambda i: (i, 0, 0)),   # x1t (per frame)
            full2d((16, 50)),      # w1
            full2d((16, 144)),     # w2 (offset-major, channel-minor K)
            full2d((8, 144)),      # w3
            full2d((128, 256)),    # fc1^T
            full2d((256, 128)),    # fc2^T (padded to 128 out lanes)
            full2d((256, 128)),    # pool1 matrix
            full2d((128, 128)),    # pool2 matrix (lane-replicated)
            full2d((8, 128)),      # channel-select mask for the flatten
            full2d((9, 256)),      # conv2 boundary masks
            full2d((9, 128)),      # conv3 boundary masks
        ],
        out_specs=pl.BlockSpec((1, 1, 128), lambda i: (i, 0, 0)),
        compiler_params=pltpu.CompilerParams(
            dimension_semantics=("parallel",)),
    )(x1t, w1, w2, w3, w4t, w5t, pf1, pf2, msel, m2, m3)

    return out[:, 0, :10], out[:, 0, 127]


# ---------------------------------------------------------------------------
# Deterministic parameter init (xavier_uniform, as in weight_initializer();
# the real module loads a .pth checkpoint which is unavailable here).
# ---------------------------------------------------------------------------
def xavier_uniform(key, shape, fan_in, fan_out):
    limit = math.sqrt(6.0 / (fan_in + fan_out))
    return jax.random.uniform(key, shape, minval=-limit, maxval=limit,
                              dtype=jnp.float32)


def make_params(key):
    ks = jax.random.split(key, 5)
    return {
        "conv1": xavier_uniform(ks[0], (16, 2, 5, 5), 2 * 25, 16 * 25),
        "conv2": xavier_uniform(ks[1], (16, 16, 3, 3), 16 * 9, 16 * 9),
        "conv3": xavier_uniform(ks[2], (8, 16, 3, 3), 16 * 9, 8 * 9),
        "fc1":   xavier_uniform(ks[3], (256, 128), 128, 256),
        "fc2":   xavier_uniform(ks[4], (10, 256), 256, 10),
    }


# ---------------------------------------------------------------------------
# Pure-JAX f32 reference (correctness sanity check of the bf16 MXU kernel)
# ---------------------------------------------------------------------------
def reference_forward(frames, params):
    dn = ("NCHW", "OIHW", "NCHW")

    def conv(x, w, stride):
        return jax.lax.conv_general_dilated(
            x, w, (stride, stride), [(1, 1), (1, 1)], dimension_numbers=dn)

    def pool(x):
        n, c, h, w = x.shape
        return x.reshape(n, c, h // 2, 2, w // 2, 2).mean(axis=(3, 5))

    acts = jnp.zeros((frames.shape[0],), jnp.float32)
    x = jnp.maximum(conv(frames, params["conv1"], 2), 0.0); acts += x.sum((1, 2, 3))
    x = jnp.maximum(conv(x, params["conv2"], 1), 0.0);      acts += x.sum((1, 2, 3))
    x = pool(x)
    x = jnp.maximum(conv(x, params["conv3"], 1), 0.0);      acts += x.sum((1, 2, 3))
    x = pool(x)
    x = x.reshape(frames.shape[0], -1)
    x = jnp.maximum(x @ params["fc1"].T, 0.0);              acts += x.sum(1)
    x = jnp.maximum(x @ params["fc2"].T, 0.0);              acts += x.sum(1)
    return x, acts


# ---------------------------------------------------------------------------
if __name__ == "__main__":
    key = jax.random.PRNGKey(0)
    pkey, fkey = jax.random.split(key)
    params = make_params(pkey)

    # Two DVS frames at the module's input resolution (1, 2, 34, 34) each,
    # processed as a small batch (parallel grid axis -> both v7x cores).
    frames = jax.random.uniform(fkey, (2, 2, 34, 34), dtype=jnp.float32)

    fwd = jax.jit(proxy_ann_forward)
    ann_out, ann_act = fwd(frames, params)
    jax.block_until_ready((ann_out, ann_act))

    ref_out, ref_act = reference_forward(frames, params)
    # bf16 MXU operands (f32 accumulation) -> use bf16-appropriate tolerances.
    ok_out = np.allclose(np.asarray(ann_out), np.asarray(ref_out),
                         rtol=5e-2, atol=2e-2)
    ok_act = np.allclose(np.asarray(ann_act), np.asarray(ref_act),
                         rtol=5e-2, atol=2.0)
    assert ok_out and ok_act, "mismatch vs pure-JAX reference"

    print("KERNEL_OK")
</pallas_src>

<mosaic_0001>
module attributes {stable_mosaic.version = 11 : i64} {
  func.func @_proxy_ann_kernel(%arg0: i32, %arg1: memref<1x50x256xbf16, #tpu.memory_space<vmem>>, %arg2: memref<16x50xbf16, #tpu.memory_space<vmem>>, %arg3: memref<16x144xbf16, #tpu.memory_space<vmem>>, %arg4: memref<8x144xbf16, #tpu.memory_space<vmem>>, %arg5: memref<128x256xbf16, #tpu.memory_space<vmem>>, %arg6: memref<256x128xbf16, #tpu.memory_space<vmem>>, %arg7: memref<256x128xbf16, #tpu.memory_space<vmem>>, %arg8: memref<128x128xbf16, #tpu.memory_space<vmem>>, %arg9: memref<8x128xf32, #tpu.memory_space<vmem>>, %arg10: memref<9x256xf32, #tpu.memory_space<vmem>>, %arg11: memref<9x128xf32, #tpu.memory_space<vmem>>, %arg12: memref<1x1x128xf32, #tpu.memory_space<vmem>>) attributes {dimension_semantics = [#tpu.dimension_semantics<parallel>], iteration_bounds = array<i64: 2>, scalar_prefetch = 0 : i64, scratch_operands = 0 : i64, tpu.core_type = #tpu.core_type<tc>, window_params = [{transform_indices = @transform_0, window_bounds = array<i64: 1, 50, 256>}, {pipeline_mode = #tpu.pipeline_mode<synchronous>, transform_indices = @transform_1, window_bounds = array<i64: 16, 50>}, {pipeline_mode = #tpu.pipeline_mode<synchronous>, transform_indices = @transform_2, window_bounds = array<i64: 16, 144>}, {pipeline_mode = #tpu.pipeline_mode<synchronous>, transform_indices = @transform_3, window_bounds = array<i64: 8, 144>}, {pipeline_mode = #tpu.pipeline_mode<synchronous>, transform_indices = @transform_4, window_bounds = array<i64: 128, 256>}, {pipeline_mode = #tpu.pipeline_mode<synchronous>, transform_indices = @transform_5, window_bounds = array<i64: 256, 128>}, {pipeline_mode = #tpu.pipeline_mode<synchronous>, transform_indices = @transform_6, window_bounds = array<i64: 256, 128>}, {pipeline_mode = #tpu.pipeline_mode<synchronous>, transform_indices = @transform_7, window_bounds = array<i64: 128, 128>}, {pipeline_mode = #tpu.pipeline_mode<synchronous>, transform_indices = @transform_8, window_bounds = array<i64: 8, 128>}, {pipeline_mode = #tpu.pipeline_mode<synchronous>, transform_indices = @transform_9, window_bounds = array<i64: 9, 256>}, {pipeline_mode = #tpu.pipeline_mode<synchronous>, transform_indices = @transform_10, window_bounds = array<i64: 9, 128>}, {transform_indices = @transform_11, window_bounds = array<i64: 1, 1, 128>}]} {
    %c0 = arith.constant 0 : index
    %c0_0 = arith.constant 0 : index
    %0 = vector.load %arg2[%c0, %c0_0] : memref<16x50xbf16, #tpu.memory_space<vmem>>, vector<16x50xbf16>
    %c0_1 = arith.constant 0 : index
    %c0_2 = arith.constant 0 : index
    %c0_3 = arith.constant 0 : index
    %1 = vector.load %arg1[%c0_1, %c0_2, %c0_3] : memref<1x50x256xbf16, #tpu.memory_space<vmem>>, vector<1x50x256xbf16>
    %2 = vector.shape_cast %1 : vector<1x50x256xbf16> to vector<50x256xbf16>
    %cst = arith.constant dense<0.000000e+00> : vector<16x256xf32>
    %3 = tpu.matmul %0, %2, %cst {dimension_numbers = #tpu.dot_dimension_numbers<[1], [0], [0], [1], [0, 0, 1, 1], [], []>} : vector<16x50xbf16>, vector<50x256xbf16>, vector<16x256xf32> -> vector<16x256xf32>
    %cst_4 = arith.constant 0.000000e+00 : f32
    %4 = vector.broadcast %cst_4 : f32 to vector<16x256xf32>
    %5 = arith.maximumf %3, %4 : vector<16x256xf32>
    %c17_i32 = arith.constant 17 : i32
    %6 = tpu.dynamic_rotate %5 by %c17_i32 dim 1 : vector<16x256xf32>, i32 -> vector<16x256xf32>
    %c0_5 = arith.constant 0 : index
    %c0_6 = arith.constant 0 : index
    %7 = vector.load %arg10[%c0_5, %c0_6] : memref<9x256xf32, #tpu.memory_space<vmem>>, vector<1x256xf32>
    %8 = vector.broadcast %7 : vector<1x256xf32> to vector<16x256xf32>
    %9 = arith.mulf %6, %8 : vector<16x256xf32>
    %10 = arith.truncf %9 : vector<16x256xf32> to vector<16x256xbf16>
    %c16_i32 = arith.constant 16 : i32
    %11 = tpu.dynamic_rotate %5 by %c16_i32 dim 1 : vector<16x256xf32>, i32 -> vector<16x256xf32>
    %c1 = arith.constant 1 : index
    %c0_7 = arith.constant 0 : index
    %12 = vector.load %arg10[%c1, %c0_7] : memref<9x256xf32, #tpu.memory_space<vmem>>, vector<1x256xf32>
    %13 = vector.broadcast %12 : vector<1x256xf32> to vector<16x256xf32>
    %14 = arith.mulf %11, %13 : vector<16x256xf32>
    %15 = arith.truncf %14 : vector<16x256xf32> to vector<16x256xbf16>
    %c15_i32 = arith.constant 15 : i32
    %16 = tpu.dynamic_rotate %5 by %c15_i32 dim 1 : vector<16x256xf32>, i32 -> vector<16x256xf32>
    %c2 = arith.constant 2 : index
    %c0_8 = arith.constant 0 : index
    %17 = vector.load %arg10[%c2, %c0_8] : memref<9x256xf32, #tpu.memory_space<vmem>>, vector<1x256xf32>
    %18 = vector.broadcast %17 : vector<1x256xf32> to vector<16x256xf32>
    %19 = arith.mulf %16, %18 : vector<16x256xf32>
    %20 = arith.truncf %19 : vector<16x256xf32> to vector<16x256xbf16>
    %c1_i32 = arith.constant 1 : i32
    %21 = tpu.dynamic_rotate %5 by %c1_i32 dim 1 : vector<16x256xf32>, i32 -> vector<16x256xf32>
    %c3 = arith.constant 3 : index
    %c0_9 = arith.constant 0 : index
    %22 = vector.load %arg10[%c3, %c0_9] : memref<9x256xf32, #tpu.memory_space<vmem>>, vector<1x256xf32>
    %23 = vector.broadcast %22 : vector<1x256xf32> to vector<16x256xf32>
    %24 = arith.mulf %21, %23 : vector<16x256xf32>
    %25 = arith.truncf %24 : vector<16x256xf32> to vector<16x256xbf16>
    %26 = arith.truncf %5 : vector<16x256xf32> to vector<16x256xbf16>
    %c255_i32 = arith.constant 255 : i32
    %27 = tpu.dynamic_rotate %5 by %c255_i32 dim 1 : vector<16x256xf32>, i32 -> vector<16x256xf32>
    %c5 = arith.constant 5 : index
    %c0_10 = arith.constant 0 : index
    %28 = vector.load %arg10[%c5, %c0_10] : memref<9x256xf32, #tpu.memory_space<vmem>>, vector<1x256xf32>
    %29 = vector.broadcast %28 : vector<1x256xf32> to vector<16x256xf32>
    %30 = arith.mulf %27, %29 : vector<16x256xf32>
    %31 = arith.truncf %30 : vector<16x256xf32> to vector<16x256xbf16>
    %c241_i32 = arith.constant 241 : i32
    %32 = tpu.dynamic_rotate %5 by %c241_i32 dim 1 : vector<16x256xf32>, i32 -> vector<16x256xf32>
    %c6 = arith.constant 6 : index
    %c0_11 = arith.constant 0 : index
    %33 = vector.load %arg10[%c6, %c0_11] : memref<9x256xf32, #tpu.memory_space<vmem>>, vector<1x256xf32>
    %34 = vector.broadcast %33 : vector<1x256xf32> to vector<16x256xf32>
    %35 = arith.mulf %32, %34 : vector<16x256xf32>
    %36 = arith.truncf %35 : vector<16x256xf32> to vector<16x256xbf16>
    %c240_i32 = arith.constant 240 : i32
    %37 = tpu.dynamic_rotate %5 by %c240_i32 dim 1 : vector<16x256xf32>, i32 -> vector<16x256xf32>
    %c7 = arith.constant 7 : index
    %c0_12 = arith.constant 0 : index
    %38 = vector.load %arg10[%c7, %c0_12] : memref<9x256xf32, #tpu.memory_space<vmem>>, vector<1x256xf32>
    %39 = vector.broadcast %38 : vector<1x256xf32> to vector<16x256xf32>
    %40 = arith.mulf %37, %39 : vector<16x256xf32>
    %41 = arith.truncf %40 : vector<16x256xf32> to vector<16x256xbf16>
    %c239_i32 = arith.constant 239 : i32
    %42 = tpu.dynamic_rotate %5 by %c239_i32 dim 1 : vector<16x256xf32>, i32 -> vector<16x256xf32>
    %c8 = arith.constant 8 : index
    %c0_13 = arith.constant 0 : index
    %43 = vector.load %arg10[%c8, %c0_13] : memref<9x256xf32, #tpu.memory_space<vmem>>, vector<1x256xf32>
    %44 = vector.broadcast %43 : vector<1x256xf32> to vector<16x256xf32>
    %45 = arith.mulf %42, %44 : vector<16x256xf32>
    %46 = arith.truncf %45 : vector<16x256xf32> to vector<16x256xbf16>
    %47 = tpu.concatenate %10, %15, %20, %25, %26, %31, %36, %41, %46 in 0 : vector<16x256xbf16>, vector<16x256xbf16>, vector<16x256xbf16>, vector<16x256xbf16>, vector<16x256xbf16>, vector<16x256xbf16>, vector<16x256xbf16>, vector<16x256xbf16>, vector<16x256xbf16> -> vector<144x256xbf16>
    %c0_14 = arith.constant 0 : index
    %c0_15 = arith.constant 0 : index
    %48 = vector.load %arg3[%c0_14, %c0_15] : memref<16x144xbf16, #tpu.memory_space<vmem>>, vector<16x144xbf16>
    %cst_16 = arith.constant dense<0.000000e+00> : vector<16x256xf32>
    %49 = tpu.matmul %48, %47, %cst_16 {dimension_numbers = #tpu.dot_dimension_numbers<[1], [0], [0], [1], [0, 0, 1, 1], [], []>} : vector<16x144xbf16>, vector<144x256xbf16>, vector<16x256xf32> -> vector<16x256xf32>
    %cst_17 = arith.constant 0.000000e+00 : f32
    %50 = vector.broadcast %cst_17 : f32 to vector<16x256xf32>
    %51 = arith.maximumf %49, %50 : vector<16x256xf32>
    %52 = arith.truncf %51 : vector<16x256xf32> to vector<16x256xbf16>
    %c0_18 = arith.constant 0 : index
    %c0_19 = arith.constant 0 : index
    %53 = vector.load %arg7[%c0_18, %c0_19] : memref<256x128xbf16, #tpu.memory_space<vmem>>, vector<256x128xbf16>
    %cst_20 = arith.constant dense<0.000000e+00> : vector<16x128xf32>
    %54 = tpu.matmul %52, %53, %cst_20 {dimension_numbers = #tpu.dot_dimension_numbers<[1], [0], [0], [1], [0, 0, 1, 1], [], []>} : vector<16x256xbf16>, vector<256x128xbf16>, vector<16x128xf32> -> vector<16x128xf32>
    %c17_i32_21 = arith.constant 17 : i32
    %55 = tpu.dynamic_rotate %54 by %c17_i32_21 dim 1 : vector<16x128xf32>, i32 -> vector<16x128xf32>
    %c0_22 = arith.constant 0 : index
    %c0_23 = arith.constant 0 : index
    %56 = vector.load %arg11[%c0_22, %c0_23] : memref<9x128xf32, #tpu.memory_space<vmem>>, vector<1x128xf32>
    %57 = vector.broadcast %56 : vector<1x128xf32> to vector<16x128xf32>
    %58 = arith.mulf %55, %57 : vector<16x128xf32>
    %59 = arith.truncf %58 : vector<16x128xf32> to vector<16x128xbf16>
    %c16_i32_24 = arith.constant 16 : i32
    %60 = tpu.dynamic_rotate %54 by %c16_i32_24 dim 1 : vector<16x128xf32>, i32 -> vector<16x128xf32>
    %c1_25 = arith.constant 1 : index
    %c0_26 = arith.constant 0 : index
    %61 = vector.load %arg11[%c1_25, %c0_26] : memref<9x128xf32, #tpu.memory_space<vmem>>, vector<1x128xf32>
    %62 = vector.broadcast %61 : vector<1x128xf32> to vector<16x128xf32>
    %63 = arith.mulf %60, %62 : vector<16x128xf32>
    %64 = arith.truncf %63 : vector<16x128xf32> to vector<16x128xbf16>
    %c15_i32_27 = arith.constant 15 : i32
    %65 = tpu.dynamic_rotate %54 by %c15_i32_27 dim 1 : vector<16x128xf32>, i32 -> vector<16x128xf32>
    %c2_28 = arith.constant 2 : index
    %c0_29 = arith.constant 0 : index
    %66 = vector.load %arg11[%c2_28, %c0_29] : memref<9x128xf32, #tpu.memory_space<vmem>>, vector<1x128xf32>
    %67 = vector.broadcast %66 : vector<1x128xf32> to vector<16x128xf32>
    %68 = arith.mulf %65, %67 : vector<16x128xf32>
    %69 = arith.truncf %68 : vector<16x128xf32> to vector<16x128xbf16>
    %c1_i32_30 = arith.constant 1 : i32
    %70 = tpu.dynamic_rotate %54 by %c1_i32_30 dim 1 : vector<16x128xf32>, i32 -> vector<16x128xf32>
    %c3_31 = arith.constant 3 : index
    %c0_32 = arith.constant 0 : index
    %71 = vector.load %arg11[%c3_31, %c0_32] : memref<9x128xf32, #tpu.memory_space<vmem>>, vector<1x128xf32>
    %72 = vector.broadcast %71 : vector<1x128xf32> to vector<16x128xf32>
    %73 = arith.mulf %70, %72 : vector<16x128xf32>
    %74 = arith.truncf %73 : vector<16x128xf32> to vector<16x128xbf16>
    %75 = arith.truncf %54 : vector<16x128xf32> to vector<16x128xbf16>
    %c127_i32 = arith.constant 127 : i32
    %76 = tpu.dynamic_rotate %54 by %c127_i32 dim 1 : vector<16x128xf32>, i32 -> vector<16x128xf32>
    %c5_33 = arith.constant 5 : index
    %c0_34 = arith.constant 0 : index
    %77 = vector.load %arg11[%c5_33, %c0_34] : memref<9x128xf32, #tpu.memory_space<vmem>>, vector<1x128xf32>
    %78 = vector.broadcast %77 : vector<1x128xf32> to vector<16x128xf32>
    %79 = arith.mulf %76, %78 : vector<16x128xf32>
    %80 = arith.truncf %79 : vector<16x128xf32> to vector<16x128xbf16>
    %c113_i32 = arith.constant 113 : i32
    %81 = tpu.dynamic_rotate %54 by %c113_i32 dim 1 : vector<16x128xf32>, i32 -> vector<16x128xf32>
    %c6_35 = arith.constant 6 : index
    %c0_36 = arith.constant 0 : index
    %82 = vector.load %arg11[%c6_35, %c0_36] : memref<9x128xf32, #tpu.memory_space<vmem>>, vector<1x128xf32>
    %83 = vector.broadcast %82 : vector<1x128xf32> to vector<16x128xf32>
    %84 = arith.mulf %81, %83 : vector<16x128xf32>
    %85 = arith.truncf %84 : vector<16x128xf32> to vector<16x128xbf16>
    %c112_i32 = arith.constant 112 : i32
    %86 = tpu.dynamic_rotate %54 by %c112_i32 dim 1 : vector<16x128xf32>, i32 -> vector<16x128xf32>
    %c7_37 = arith.constant 7 : index
    %c0_38 = arith.constant 0 : index
    %87 = vector.load %arg11[%c7_37, %c0_38] : memref<9x128xf32, #tpu.memory_space<vmem>>, vector<1x128xf32>
    %88 = vector.broadcast %87 : vector<1x128xf32> to vector<16x128xf32>
    %89 = arith.mulf %86, %88 : vector<16x128xf32>
    %90 = arith.truncf %89 : vector<16x128xf32> to vector<16x128xbf16>
    %c111_i32 = arith.constant 111 : i32
    %91 = tpu.dynamic_rotate %54 by %c111_i32 dim 1 : vector<16x128xf32>, i32 -> vector<16x128xf32>
    %c8_39 = arith.constant 8 : index
    %c0_40 = arith.constant 0 : index
    %92 = vector.load %arg11[%c8_39, %c0_40] : memref<9x128xf32, #tpu.memory_space<vmem>>, vector<1x128xf32>
    %93 = vector.broadcast %92 : vector<1x128xf32> to vector<16x128xf32>
    %94 = arith.mulf %91, %93 : vector<16x128xf32>
    %95 = arith.truncf %94 : vector<16x128xf32> to vector<16x128xbf16>
    %96 = tpu.concatenate %59, %64, %69, %74, %75, %80, %85, %90, %95 in 0 : vector<16x128xbf16>, vector<16x128xbf16>, vector<16x128xbf16>, vector<16x128xbf16>, vector<16x128xbf16>, vector<16x128xbf16>, vector<16x128xbf16>, vector<16x128xbf16>, vector<16x128xbf16> -> vector<144x128xbf16>
    %c0_41 = arith.constant 0 : index
    %c0_42 = arith.constant 0 : index
    %97 = vector.load %arg4[%c0_41, %c0_42] : memref<8x144xbf16, #tpu.memory_space<vmem>>, vector<8x144xbf16>
    %cst_43 = arith.constant dense<0.000000e+00> : vector<8x128xf32>
    %98 = tpu.matmul %97, %96, %cst_43 {dimension_numbers = #tpu.dot_dimension_numbers<[1], [0], [0], [1], [0, 0, 1, 1], [], []>} : vector<8x144xbf16>, vector<144x128xbf16>, vector<8x128xf32> -> vector<8x128xf32>
    %cst_44 = arith.constant 0.000000e+00 : f32
    %99 = vector.broadcast %cst_44 : f32 to vector<8x128xf32>
    %100 = arith.maximumf %98, %99 : vector<8x128xf32>
    %101 = arith.truncf %100 : vector<8x128xf32> to vector<8x128xbf16>
    %c0_45 = arith.constant 0 : index
    %c0_46 = arith.constant 0 : index
    %102 = vector.load %arg8[%c0_45, %c0_46] : memref<128x128xbf16, #tpu.memory_space<vmem>>, vector<128x128xbf16>
    %cst_47 = arith.constant dense<0.000000e+00> : vector<8x128xf32>
    %103 = tpu.matmul %101, %102, %cst_47 {dimension_numbers = #tpu.dot_dimension_numbers<[1], [0], [0], [1], [0, 0, 1, 1], [], []>} : vector<8x128xbf16>, vector<128x128xbf16>, vector<8x128xf32> -> vector<8x128xf32>
    %c0_48 = arith.constant 0 : index
    %c0_49 = arith.constant 0 : index
    %104 = vector.load %arg9[%c0_48, %c0_49] : memref<8x128xf32, #tpu.memory_space<vmem>>, vector<8x128xf32>
    %105 = arith.mulf %103, %104 : vector<8x128xf32>
    %cst_50 = arith.constant dense<0.000000e+00> : vector<128xf32>
    %106 = vector.multi_reduction <add>, %105, %cst_50 [0] : vector<8x128xf32> to vector<128xf32>
    %107 = vector.shape_cast %106 : vector<128xf32> to vector<1x128xf32>
    %108 = arith.truncf %107 : vector<1x128xf32> to vector<1x128xbf16>
    %c0_51 = arith.constant 0 : index
    %c0_52 = arith.constant 0 : index
    %109 = vector.load %arg5[%c0_51, %c0_52] : memref<128x256xbf16, #tpu.memory_space<vmem>>, vector<128x256xbf16>
    %cst_53 = arith.constant dense<0.000000e+00> : vector<1x256xf32>
    %110 = tpu.matmul %108, %109, %cst_53 {dimension_numbers = #tpu.dot_dimension_numbers<[1], [0], [0], [1], [0, 0, 1, 1], [], []>} : vector<1x128xbf16>, vector<128x256xbf16>, vector<1x256xf32> -> vector<1x256xf32>
    %cst_54 = arith.constant 0.000000e+00 : f32
    %111 = vector.broadcast %cst_54 : f32 to vector<1x256xf32>
    %112 = arith.maximumf %110, %111 : vector<1x256xf32>
    %113 = arith.truncf %112 : vector<1x256xf32> to vector<1x256xbf16>
    %c0_55 = arith.constant 0 : index
    %c0_56 = arith.constant 0 : index
    %114 = vector.load %arg6[%c0_55, %c0_56] : memref<256x128xbf16, #tpu.memory_space<vmem>>, vector<256x128xbf16>
    %cst_57 = arith.constant dense<0.000000e+00> : vector<1x128xf32>
    %115 = tpu.matmul %113, %114, %cst_57 {dimension_numbers = #tpu.dot_dimension_numbers<[1], [0], [0], [1], [0, 0, 1, 1], [], []>} : vector<1x256xbf16>, vector<256x128xbf16>, vector<1x128xf32> -> vector<1x128xf32>
    %cst_58 = arith.constant 0.000000e+00 : f32
    %116 = vector.broadcast %cst_58 : f32 to vector<1x128xf32>
    %117 = arith.maximumf %115, %116 : vector<1x128xf32>
    %118 = arith.addf %5, %51 : vector<16x256xf32>
    %cst_59 = arith.constant dense<0.000000e+00> : vector<256xf32>
    %119 = vector.multi_reduction <add>, %118, %cst_59 [0] : vector<16x256xf32> to vector<256xf32>
    %120 = vector.shape_cast %119 : vector<256xf32> to vector<1x256xf32>
    %121 = arith.addf %120, %112 : vector<1x256xf32>
    %cst_60 = arith.constant dense<0.000000e+00> : vector<128xf32>
    %122 = vector.multi_reduction <add>, %100, %cst_60 [0] : vector<8x128xf32> to vector<128xf32>
    %123 = vector.shape_cast %122 : vector<128xf32> to vector<1x128xf32>
    %124 = arith.addf %123, %117 : vector<1x128xf32>
    %cst_61 = arith.constant dense<0.000000e+00> : vector<1xf32>
    %125 = vector.multi_reduction <add>, %121, %cst_61 [1] : vector<1x256xf32> to vector<1xf32>
    %126 = vector.shape_cast %125 : vector<1xf32> to vector<1x1xf32>
    %cst_62 = arith.constant dense<0.000000e+00> : vector<1xf32>
    %127 = vector.multi_reduction <add>, %124, %cst_62 [1] : vector<1x128xf32> to vector<1xf32>
    %128 = vector.shape_cast %127 : vector<1xf32> to vector<1x1xf32>
    %129 = arith.addf %126, %128 : vector<1x1xf32>
    %130 = tpu.iota {dimensions = array<i32: 1>} : vector<1x128xi32>
    %c127_i32_63 = arith.constant 127 : i32
    %131 = vector.broadcast %c127_i32_63 : i32 to vector<1x128xi32>
    %132 = arith.cmpi eq, %130, %131 : vector<1x128xi32>
    %133 = arith.extui %132 : vector<1x128xi1> to vector<1x128xi32>
    %134 = arith.sitofp %133 : vector<1x128xi32> to vector<1x128xf32>
    %135 = vector.broadcast %129 : vector<1x1xf32> to vector<1x128xf32>
    %136 = arith.mulf %134, %135 : vector<1x128xf32>
    %137 = arith.addf %117, %136 : vector<1x128xf32>
    %c0_64 = arith.constant 0 : index
    %c0_65 = arith.constant 0 : index
    %c0_66 = arith.constant 0 : index
    %138 = vector.load %arg12[%c0_64, %c0_65, %c0_66] : memref<1x1x128xf32, #tpu.memory_space<vmem>>, vector<1x1x128xf32>
    %139 = vector.shape_cast %138 : vector<1x1x128xf32> to vector<1x128xf32>
    %140 = vector.shape_cast %137 : vector<1x128xf32> to vector<1x1x128xf32>
    tpu.vector_store %arg12[%c0_64, %c0_65, %c0_66], %140 {strides = array<i32>} : memref<1x1x128xf32, #tpu.memory_space<vmem>>, vector<1x1x128xf32>,
    return
  }
  func.func @transform_0(%arg0: i32) -> (i32, i32, i32) {
    %c0_i32 = arith.constant 0 : i32
    %c0_i32_0 = arith.constant 0 : i32
    %c0_i32_1 = arith.constant 0 : i32
    return %arg0, %c0_i32, %c0_i32_0 : i32, i32, i32
  }
  func.func @transform_1(%arg0: i32) -> (i32, i32) {
    %c0_i32 = arith.constant 0 : i32
    %c0_i32_0 = arith.constant 0 : i32
    %c0_i32_1 = arith.constant 0 : i32
    return %c0_i32, %c0_i32_0 : i32, i32
  }
  func.func @transform_2(%arg0: i32) -> (i32, i32) {
    %c0_i32 = arith.constant 0 : i32
    %c0_i32_0 = arith.constant 0 : i32
    %c0_i32_1 = arith.constant 0 : i32
    return %c0_i32, %c0_i32_0 : i32, i32
  }
  func.func @transform_3(%arg0: i32) -> (i32, i32) {
    %c0_i32 = arith.constant 0 : i32
    %c0_i32_0 = arith.constant 0 : i32
    %c0_i32_1 = arith.constant 0 : i32
    return %c0_i32, %c0_i32_0 : i32, i32
  }
  func.func @transform_4(%arg0: i32) -> (i32, i32) {
    %c0_i32 = arith.constant 0 : i32
    %c0_i32_0 = arith.constant 0 : i32
    %c0_i32_1 = arith.constant 0 : i32
    return %c0_i32, %c0_i32_0 : i32, i32
  }
  func.func @transform_5(%arg0: i32) -> (i32, i32) {
    %c0_i32 = arith.constant 0 : i32
    %c0_i32_0 = arith.constant 0 : i32
    %c0_i32_1 = arith.constant 0 : i32
    return %c0_i32, %c0_i32_0 : i32, i32
  }
  func.func @transform_6(%arg0: i32) -> (i32, i32) {
    %c0_i32 = arith.constant 0 : i32
    %c0_i32_0 = arith.constant 0 : i32
    %c0_i32_1 = arith.constant 0 : i32
    return %c0_i32, %c0_i32_0 : i32, i32
  }
  func.func @transform_7(%arg0: i32) -> (i32, i32) {
    %c0_i32 = arith.constant 0 : i32
    %c0_i32_0 = arith.constant 0 : i32
    %c0_i32_1 = arith.constant 0 : i32
    return %c0_i32, %c0_i32_0 : i32, i32
  }
  func.func @transform_8(%arg0: i32) -> (i32, i32) {
    %c0_i32 = arith.constant 0 : i32
    %c0_i32_0 = arith.constant 0 : i32
    %c0_i32_1 = arith.constant 0 : i32
    return %c0_i32, %c0_i32_0 : i32, i32
  }
  func.func @transform_9(%arg0: i32) -> (i32, i32) {
    %c0_i32 = arith.constant 0 : i32
    %c0_i32_0 = arith.constant 0 : i32
    %c0_i32_1 = arith.constant 0 : i32
    return %c0_i32, %c0_i32_0 : i32, i32
  }
  func.func @transform_10(%arg0: i32) -> (i32, i32) {
    %c0_i32 = arith.constant 0 : i32
    %c0_i32_0 = arith.constant 0 : i32
    %c0_i32_1 = arith.constant 0 : i32
    return %c0_i32, %c0_i32_0 : i32, i32
  }
  func.func @transform_11(%arg0: i32) -> (i32, i32, i32) {
    %c0_i32 = arith.constant 0 : i32
    %c0_i32_0 = arith.constant 0 : i32
    %c0_i32_1 = arith.constant 0 : i32
    return %arg0, %c0_i32, %c0_i32_0 : i32, i32, i32
  }
}

</mosaic_0001>

<bundles_post_ra>
// kernel: proxy_ann_forward.1
= control target key start
LH: loop header
LB: loop body
LE: loop exit
PB: predicated region body
PF: predicated region fallthrough
CT: control target
= control target key end

     0   :  { %s1994_s17 = smov 0   ;;  %s2526_s0 = inlined_call_operand.vmem [shape: bf16[2,50,256], index: 0, kind: input, shape index: {}]   ;;  %s2527_s1 = inlined_call_operand.vmem [shape: bf16[16,50], index: 1, kind: input, shape index: {}]   ;;  %s2528_s2 = inlined_call_operand.vmem [shape: bf16[16,144], index: 2, kind: input, shape index: {}]   ;;  %s2529_s3 = inlined_call_operand.vmem [shape: bf16[8,144], index: 3, kind: input, shape index: {}]   ;;  %s2530_s4 = inlined_call_operand.vmem [shape: bf16[128,256], index: 4, kind: input, shape index: {}]   ;;  %s2531_s5 = inlined_call_operand.vmem [shape: bf16[256,128], index: 5, kind: input, shape index: {}]   ;;  %s2532_s6 = inlined_call_operand.vmem [shape: bf16[256,128], index: 6, kind: input, shape index: {}]   ;;  %s2533_s7 = inlined_call_operand.vmem [shape: bf16[128,128], index: 7, kind: input, shape index: {}]   ;;  %s2534_s8 = inlined_call_operand.vmem [shape: f32[8,128], index: 8, kind: input, shape index: {}]   ;;  %s2535_s9 = inlined_call_operand.vmem [shape: f32[9,256], index: 9, kind: input, shape index: {}]   ;;  %s2536_s10 = inlined_call_operand.vmem [shape: f32[9,128], index: 10, kind: input, shape index: {}]   ;;  %s2537_s11 = inlined_call_operand.vmem [shape: f32[2,1,128], index: 11, kind: output, shape index: {}]  }
   0x1 LB: > { %s1644_s18 = sadd.s32 4294967295, %s1921_s17   ;;  %p1648_p0 = scmp.ge.s32.totalorder %s1921_s17, 1  ;;  %s1921_s17 = sphi %s1994_s17, %s21_s17  }
   0x2   : > { %p337_p1 = scmp.lt.s32.totalorder %s1921_s17, 3 }
   0x4   : > { %p338_p2 = pnand %p1648_p0, %p337_p1 }
   0x5   : > { %p375_p3 = scmp.lt.s32.totalorder (!%p338_p2), %s1644_s18, 1  ;;  %v1923_v0 = vmov (!%p338_p2), 0   ;;  %vm437_vm0 = vcmask (!%p338_p2), 1040384   ;;  %vm433_vm1 = vcmask (!%p338_p2), 408576   ;;  %v1845_v11 = vld [vmem:[%s2527_s1] sm:$0xff] (!%p338_p2)   ;;  %s1924_s25 = smov (!%p338_p2), 17   ;;  %v499_v41 = vlaneseq (!%p338_p2) }
   0x6   : > { %341 = sbr.rel (%p338_p2) target bundleno = 2055 (0x807), region = 64  ;;  %476 = vmatprep.mubr.bf16.mxu0 (!%p338_p2), %v1923_v0  ;;  %s1925_s26 = smov (!%p338_p2), 16   ;;  %v1848_v20 = vld [vmem:[%s2528_s2 + $0x4] ss:$8 sps:$4 sm:$0xff] (!%p338_p2)   ;;  %vm761_vm2 = vcmask (!%p338_p2), 130048   ;;  %v1853_v25 = vld [vmem:[%s2532_s6 + $0x50] sm:$0xff] (!%p338_p2)  }
   0x7   : > { %s1926_s27 = smov (!%p338_p2), 15   ;;  %s1927_s28 = smov (!%p338_p2), 1   ;;  %1670 = vmatprep.mubr.msk.bf16.mxu1 (!%p338_p2), %vm761_vm2, %v1848_v20  ;;  %v1849_v21 = vld [vmem:[%s2532_s6 + $0x40] sm:$0xff] (!%p338_p2)   ;;  %v1851_v23 = vld [vmem:[%s2532_s6 + $0x48] sm:$0xff] (!%p338_p2)   ;;  %v1854_v26 = vld [vmem:[%s2532_s6 + $0x10] sm:$0xff] (!%p338_p2)   ;;  %v509_v44 = vshrl.u32 (!%p338_p2), %v499_v41, 7 }
   0x8   : > { %s1928_s29 = smov (!%p338_p2), 127   ;;  %s1929_s30 = smov (!%p338_p2), 113   ;;  %v1850_v22 = vld [vmem:[%s2532_s6] sm:$0xff] (!%p338_p2)   ;;  %v1852_v24 = vld [vmem:[%s2532_s6 + $0x8] sm:$0xff] (!%p338_p2)   ;;  %v1855_v27 = vld [vmem:[%s2532_s6 + $0x58] sm:$0xff] (!%p338_p2)   ;;  %v2132_v46 = vand.u32 (!%p338_p2), 127, %v499_v41 }
   0x9   : > { %s1930_s12 = smov (!%p338_p2), 112   ;;  %s2538_s13 = smov (!%p338_p2), 111   ;;  %v1856_v28 = vld [vmem:[%s2532_s6 + $0x18] sm:$0xff] (!%p338_p2)   ;;  %v1857_v29 = vld [vmem:[%s2532_s6 + $0x60] sm:$0xff] (!%p338_p2)   ;;  %v1859_v31 = vld [vmem:[%s2532_s6 + $0x68] sm:$0xff] (!%p338_p2)   ;;  %v2136_v48 = vsub.s32 (!%p338_p2), 0, %v509_v44 }
   0xa   : > { %v1858_v30 = vld [vmem:[%s2532_s6 + $0x20] sm:$0xff] (!%p338_p2)   ;;  %v1860_v32 = vld [vmem:[%s2532_s6 + $0x28] sm:$0xff] (!%p338_p2)   ;;  %v2138_v49 = vsub.s32 (!%p338_p2), 1, %v509_v44  ;;  %vm501_vm3 = vcmp.lt.s32.totalorder (!%p338_p2), %v2132_v46, 17  ;;  %vm532_vm4 = vcmp.lt.s32.totalorder (!%p338_p2), %v2132_v46, 16  ;;  %vm564_vm5 = vcmp.lt.s32.totalorder (!%p338_p2), %v2132_v46, 15 }
   0xb   : > { %v506_v50 = vld [vmem:[%s2535_s9] ss:$8 sm:$0x3] (!%p338_p2)  ;;  %v1661_v54 = vld [vmem:[%s2535_s9 + $0x1] ss:$8 sm:$0x3] (!%p338_p2) }
   0xc   : > { %v511_v53 = vrot.slane (!%p338_p2), %v506_v50, %v2136_v48  ;;  %v515_v55 = vrot.slane (!%p338_p2), %v506_v50, %v2138_v49  ;;  %v543_v60 = vrot.slane (!%p338_p2), %v1661_v54, %v2136_v48  ;;  %v547_v61 = vrot.slane (!%p338_p2), %v1661_v54, %v2138_v49 }
   0xd   : > { %s2542_s18 = smov (!%p375_p3, %s1644_s18), 1  ;;  %vm596_vm6 = vcmp.lt.s32.totalorder %v2132_v46, 1  ;;  %vm630_vm7 = vcmp.lt.s32.totalorder %v2132_v46, 127  ;;  %vm662_vm8 = vcmp.lt.s32.totalorder %v2132_v46, 113  ;;  %vm694_vm9 = vcmp.lt.s32.totalorder %v2132_v46, 112 }
   0xe   : > { %s1814_s19 = smul.u32 56, %s2542_s18  ;;  %vm726_vm10 = vcmp.lt.s32.totalorder %v2132_v46, 111  ;;  %vm1933_vm11 = vmmov 0   ;;  %vm1591_vm12 = vcmp.eq.s32.totalorder %v2132_v46, 127 }
  0x10   : > { %s379_s22 = scalar_lea.vmem %s2526_s0, %s1814_s19 }
  0x11   : > { %v1834_v1 = vld [vmem:[%s379_s22 + $0x4] ss:$8 sps:$4 sm:$0xff]   ;;  %v1836_v2 = vld [vmem:[%s379_s22] ss:$8 sps:$4 sm:$0xff]   ;;  %v1837_v3 = vld [vmem:[%s379_s22 + $0x14] ss:$8 sps:$4 sm:$0xff]  }
  0x12   : > { %444 = vmatprep.subr.bf16.mxu0 %v1834_v1  ;;  %v1839_v4 = vld [vmem:[%s379_s22 + $0x10] ss:$8 sps:$4 sm:$0xff]   ;;  %v1840_v5 = vld [vmem:[%s379_s22 + $0x24] ss:$8 sps:$4 sm:$0xff]   ;;  %v1842_v7 = vld [vmem:[%s379_s22 + $0x20] ss:$8 sps:$4 sm:$0xff]  }
  0x13   : > { %445 = vmatpush1.bf16.msra.mxu0 %v1836_v2  ;;  %v392_v6 = vld [vmem:[%s379_s22 + $0x30] sm:$0x11]  ;;  %v1662_v2 = vld [vmem:[%s2535_s9 + $0x2] ss:$8 sm:$0x3] }
  0x14   : > { %446 = vmatprep.subr.bf16.mxu0 %v1837_v3  ;;  %v1657_v8 = vcombine.low %v392_v6, %v392_v6  ;;  %v1658_v10 = vcombine.high %v392_v6, %v392_v6 }
  0x16   : > { %v439_v9 = vsel %vm437_vm0, %v1657_v8, 0 }
  0x17   : > { %447 = vmatpush1.bf16.msra.mxu0 %v1839_v4 }
  0x18   : > { %448 = vmatprep.subr.bf16.mxu0 %v1840_v5 }
  0x1b   : > { %449 = vmatpush1.bf16.msra.mxu0 %v1842_v7 }
  0x1c   : > { %1659 = vmatprep.subr.msk.bf16.mxu0 %vm437_vm0, %v1658_v10 }
  0x1f   : > { %451 = vmatpush1.bf16.msra.mxu0 %v439_v9 }
  0x20   : > { %1741 = vmatprep.subr.bf16.mxu0 %v1849_v21 }
  0x22   : > { %1660 = vmatmul.mubr.msk.bf16.vlgmr.msra.gmra.mrb[0].mxu0 %vm433_vm1, %v1845_v11 }
  0x23   : > { %1742 = vmatpush3.bf16.msra.mxu0 %v1850_v22  ;;  %v1663_v22 = vld [vmem:[%s2535_s9 + $0x3] ss:$8 sm:$0x3] }
  0x24   : > { %1743 = vmatprep.subr.bf16.mxu0 %v1851_v23 }
  0x27   : > { %1744 = vmatpush3.bf16.msra.mxu0 %v1852_v24 }
  0x28   : > { %1745 = vmatprep.subr.bf16.mxu0 %v1853_v25 }
  0x2b   : > { %1746 = vmatpush3.bf16.msra.mxu0 %v1854_v26 }
  0x2c   : > { %1747 = vmatprep.subr.bf16.mxu0 %v1855_v27 }
  0x2f   : > { %1748 = vmatpush3.bf16.msra.mxu0 %v1856_v28 }
  0x30   : > { %1749 = vmatprep.subr.bf16.mxu0 %v1857_v29 }
  0x33   : > { %1750 = vmatpush3.bf16.msra.mxu0 %v1858_v30 }
  0x34   : > { %1751 = vmatprep.subr.bf16.mxu0 %v1859_v31  ;;  %v607_v31 = vrot.slane %v1663_v22, %v2136_v48 }
  0x37   : > { %1752 = vmatpush3.bf16.msra.mxu0 %v1860_v32  ;;  %v611_v32 = vrot.slane %v1663_v22, %v2138_v49 }
  0xf5   : > { %v478_v12 = vpop.f32.mrb[0].mxu0 }
  0xf6   : > { %v2014_v13 = vmax.f32 %v478_v12, 0.0  ;;  %v480_v14 = vpop.f32.mrb[1].mxu0  ;;  %v575_v12 = vrot.slane %v1662_v2, %v2136_v48 }
  0xf7   : > { %v2016_v15 = vmax.f32 %v480_v14, 0.0  ;;  %v482_v16 = vpop.f32.mrb[2].mxu0  ;;  %v579_v14 = vrot.slane %v1662_v2, %v2138_v49 }
  0xf8   : > { %491 = vrot.lane.b32.xlu0 %v2014_v13, %s1924_s25  ;;  %v484_v17 = vpop.f32.mrb[3].mxu0  ;;  %v2022_v18 = vmax.f32 %v482_v16, 0.0 }
  0xf9   : > { %495 = vrot.lane.b32.xlu1 %v2016_v15, %s1924_s25  ;;  %v2048_v19 = vmax.f32 %v484_v17, 0.0 }
  0xfb   : > { %v621_v2 = vpack.c.bf16 %v2048_v19, %v2016_v15 }
  0xfc   : > { %524 = vrot.lane.b32.xlu0 %v2014_v13, %s1925_s26 }
  0xfd   : > { %526 = vrot.lane.b32.xlu1 %v2022_v18, %s1925_s26 }
 0x100   : > { %556 = vrot.lane.b32.xlu0 %v2014_v13, %s1926_s27 }
 0x101   : > { %558 = vrot.lane.b32.xlu1 %v2022_v18, %s1926_s27 }
 0x104   : > { %588 = vrot.lane.b32.xlu0 %v2014_v13, %s1927_s28 }
 0x105   : > { %590 = vrot.lane.b32.xlu1 %v2022_v18, %s1927_s28 }
 0x108   : > { %528 = vrot.lane.b32.xlu0 %v2016_v15, %s1925_s26 }
 0x109   : > { %624 = vrot.lane.b32.xlu1 %v2022_v18, %s1928_s29 }
 0x10c   : > { %560 = vrot.lane.b32.xlu0 %v2016_v15, %s1926_s27 }
 0x10d   : > { %656 = vrot.lane.b32.xlu1 %v2022_v18, %s1929_s30 }
 0x110   : > { %592 = vrot.lane.b32.xlu0 %v2016_v15, %s1927_s28 }
 0x111   : > { %688 = vrot.lane.b32.xlu1 %v2022_v18, %s1930_s12 }
 0x114   : > { %493 = vrot.lane.b32.xlu0 %v2022_v18, %s1924_s25 }
 0x115   : > { %497 = vrot.lane.b32.xlu1 %v2048_v19, %s1924_s25 }
 0x118   : > { %622 = vrot.lane.b32.xlu0 %v2014_v13, %s1928_s29 }
 0x119   : > { %530 = vrot.lane.b32.xlu1 %v2048_v19, %s1925_s26 }
 0x11c   : > { %626 = vrot.lane.b32.xlu0 %v2016_v15, %s1928_s29 }
 0x11d   : > { %562 = vrot.lane.b32.xlu1 %v2048_v19, %s1926_s27 }
 0x120   : > { %654 = vrot.lane.b32.xlu0 %v2014_v13, %s1929_s30 }
 0x121   : > { %594 = vrot.lane.b32.xlu1 %v2048_v19, %s1927_s28 }
 0x124   : > { %658 = vrot.lane.b32.xlu0 %v2016_v15, %s1929_s30 }
 0x125   : > { %720 = vrot.lane.b32.xlu1 %v2022_v18, %s2538_s13 }
 0x128   : > { %686 = vrot.lane.b32.xlu0 %v2014_v13, %s1930_s12 }
 0x129   : > { %628 = vrot.lane.b32.xlu1 %v2048_v19, %s1928_s29 }
 0x12c   : > { %690 = vrot.lane.b32.xlu0 %v2016_v15, %s1930_s12 }
 0x12d   : > { %660 = vrot.lane.b32.xlu1 %v2048_v19, %s1929_s30 }
 0x130   : > { %718 = vrot.lane.b32.xlu0 %v2014_v13, %s2538_s13 }
 0x131   : > { %692 = vrot.lane.b32.xlu1 %v2048_v19, %s1930_s12 }
 0x134   : > { %722 = vrot.lane.b32.xlu0 %v2016_v15, %s2538_s13 }
 0x135   : > { %724 = vrot.lane.b32.xlu1 %v2048_v19, %s2538_s13 }
 0x16a   : > { %v492_v33 = vpop.permute.xlu0 %491 }
 0x16b   : > { %v496_v34 = vpop.permute.xlu1 %495 }
 0x16c   : > { %v502_v56 = vsel %vm501_vm3, %v492_v33, %v496_v34  ;;  %v504_v57 = vsel %vm501_vm3, %v496_v34, %v492_v33 }
 0x16d   : > { %v518_v1 = vmul.f32 %v511_v53, %v504_v57  ;;  %v519_v4 = vmul.f32 %v515_v55, %v502_v56 }
 0x16e   : > { %v525_v35 = vpop.permute.xlu0 %524 }
 0x16f   : > { %v527_v36 = vpop.permute.xlu1 %526 }
 0x172   : > { %v557_v37 = vpop.permute.xlu0 %556 }
 0x173   : > { %v559_v38 = vpop.permute.xlu1 %558 }
 0x176   : > { %v2126_v39 = vpop.permute.xlu0 %588 }
 0x177   : > { %v2128_v40 = vpop.permute.xlu1 %590 }
 0x17a   : > { %v529_v42 = vpop.permute.xlu0 %528 }
 0x17b   : > { %v2130_v43 = vpop.permute.xlu1 %624  ;;  %v533_v6 = vsel %vm532_vm4, %v525_v35, %v529_v42  ;;  %v535_v7 = vsel %vm532_vm4, %v529_v42, %v525_v35 }
 0x17c   : > { %v550_v20 = vmul.f32 %v543_v60, %v535_v7  ;;  %v551_v21 = vmul.f32 %v547_v61, %v533_v6  ;;  %v620_v7 = vpack.c.bf16 %v2022_v18, %v2014_v13 }
 0x17e   : > { %v561_v45 = vpop.permute.xlu0 %560 }
 0x17f   : > { %v2134_v47 = vpop.permute.xlu1 %656  ;;  %v565_v25 = vsel %vm564_vm5, %v557_v37, %v561_v45  ;;  %v567_v26 = vsel %vm564_vm5, %v561_v45, %v557_v37 }
 0x180   : > { %v582_v35 = vmul.f32 %v575_v12, %v567_v26 }
 0x182   : > { %v593_v51 = vpop.permute.xlu0 %592 }
 0x183   : > { %v2144_v52 = vpop.permute.xlu1 %688  ;;  %v597_v42 = vsel %vm596_vm6, %v2126_v39, %v593_v51  ;;  %v599_v44 = vsel %vm596_vm6, %v593_v51, %v2126_v39  ;;  %v1664_v39 = vld [vmem:[%s2535_s9 + $0x5] ss:$8 sm:$0x3] }
 0x184   : > { %v614_v56 = vmul.f32 %v607_v31, %v599_v44  ;;  %v615_v57 = vmul.f32 %v611_v32, %v597_v42 }
 0x186   : > { %v494_v58 = vpop.permute.xlu0 %493 }
 0x187   : > { %v498_v59 = vpop.permute.xlu1 %497 }
 0x188   : > { %v503_v62 = vsel %vm501_vm3, %v494_v58, %v498_v59  ;;  %v505_v63 = vsel %vm501_vm3, %v498_v59, %v494_v58 }
 0x189   : > { %v520_v3 = vmul.f32 %v511_v53, %v505_v63  ;;  %v521_v5 = vmul.f32 %v515_v55, %v503_v62  ;;  %v641_v63 = vrot.slane %v1664_v39, %v2136_v48 }
 0x18a   : > { %v623_v8 = vpop.permute.xlu0 %622 }
 0x18b   : > { %v531_v9 = vpop.permute.xlu1 %530  ;;  %v523_v10 = vpack.c.bf16 %v521_v5, %v519_v4  ;;  %v522_v11 = vpack.c.bf16 %v520_v3, %v518_v1  ;;  %v1665_v1 = vld [vmem:[%s2535_s9 + $0x6] ss:$8 sm:$0x3] }
 0x18c   : > { %v534_v16 = vsel %vm532_vm4, %v527_v36, %v531_v9  ;;  %v536_v17 = vsel %vm532_vm4, %v531_v9, %v527_v36  ;;  %v583_v36 = vmul.f32 %v579_v14, %v565_v25  ;;  %v673_v9 = vrot.slane %v1665_v1, %v2136_v48 }
 0x18d   : > { %v552_v23 = vmul.f32 %v543_v60, %v536_v17  ;;  %v553_v24 = vmul.f32 %v547_v61, %v534_v16  ;;  %765 = vmatprep.subr.bf16.mxu1 %v523_v10  ;;  %v677_v10 = vrot.slane %v1665_v1, %v2138_v49 }
 0x18e   : > { %v627_v27 = vpop.permute.xlu0 %626  ;;  %766 = vmatpush1.bf16.msra.mxu1 %v522_v11 }
 0x18f   : > { %v563_v28 = vpop.permute.xlu1 %562  ;;  %v555_v29 = vpack.c.bf16 %v553_v24, %v551_v21  ;;  %v554_v30 = vpack.c.bf16 %v552_v23, %v550_v20  ;;  %v631_v3 = vsel %vm630_vm7, %v623_v8, %v627_v27  ;;  %v633_v4 = vsel %vm630_vm7, %v627_v27, %v623_v8  ;;  %v1666_v20 = vld [vmem:[%s2535_s9 + $0x7] ss:$8 sm:$0x3] }
 0x190   : > { %v566_v33 = vsel %vm564_vm5, %v559_v38, %v563_v28  ;;  %v568_v34 = vsel %vm564_vm5, %v563_v28, %v559_v38  ;;  %v705_v26 = vrot.slane %v1666_v20, %v2136_v48  ;;  %v709_v27 = vrot.slane %v1666_v20, %v2138_v49 }
 0x191   : > { %v584_v37 = vmul.f32 %v575_v12, %v568_v34  ;;  %v585_v41 = vmul.f32 %v579_v14, %v566_v33  ;;  %767 = vmatprep.subr.bf16.mxu1 %v555_v29  ;;  %v648_v12 = vmul.f32 %v641_v63, %v631_v3  ;;  %v1667_v34 = vld [vmem:[%s2535_s9 + $0x10] ss:$8 sm:$0x3]  ;;  %v1846_v3 = vld [vmem:[%s2528_s2] ss:$8 sps:$4 sm:$0xff]  }
 0x192   : > { %v655_v45 = vpop.permute.xlu0 %654  ;;  %768 = vmatpush1.bf16.msra.mxu1 %v554_v30 }
 0x193   : > { %v595_v50 = vpop.permute.xlu1 %594  ;;  %v587_v53 = vpack.c.bf16 %v585_v41, %v583_v36  ;;  %v586_v54 = vpack.c.bf16 %v584_v37, %v582_v35 }
 0x194   : > { %v598_v38 = vsel %vm596_vm6, %v2128_v40, %v595_v50  ;;  %v600_v55 = vsel %vm596_vm6, %v595_v50, %v2128_v40  ;;  %v645_v40 = vrot.slane %v1664_v39, %v2138_v49  ;;  %v737_v50 = vrot.slane %v1667_v34, %v2136_v48 }
 0x195   : > { %v616_v58 = vmul.f32 %v607_v31, %v600_v55  ;;  %v617_v59 = vmul.f32 %v611_v32, %v598_v38  ;;  %769 = vmatprep.subr.bf16.mxu1 %v587_v53  ;;  %v741_v53 = vrot.slane %v1667_v34, %v2138_v49  ;;  %v1869_v34 = vld [vmem:[%s2533_s7 + $0x10] sm:$0xff]  }
 0x196   : > { %v659_v51 = vpop.permute.xlu0 %658  ;;  %770 = vmatpush1.bf16.msra.mxu1 %v586_v54  ;;  %v649_v14 = vmul.f32 %v645_v40, %v633_v4  ;;  %v1861_v4 = vld [vmem:[%s2532_s6 + $0x70] sm:$0xff]  }
 0x197   : > { %v2198_v60 = vpop.permute.xlu1 %720  ;;  %v619_v61 = vpack.c.bf16 %v617_v59, %v615_v57  ;;  %v618_v62 = vpack.c.bf16 %v616_v58, %v614_v56  ;;  %v663_v21 = vsel %vm662_vm8, %v655_v45, %v659_v51  ;;  %v665_v22 = vsel %vm662_vm8, %v659_v51, %v655_v45  ;;  %1753 = vmatprep.subr.bf16.mxu0 %v1861_v4 }
 0x198   : > { %v680_v30 = vmul.f32 %v673_v9, %v663_v21  ;;  %v681_v31 = vmul.f32 %v677_v10, %v665_v22 }
 0x199   : > { %771 = vmatprep.subr.bf16.mxu1 %v619_v61 }
 0x19a   : > { %v687_v5 = vpop.permute.xlu0 %686  ;;  %772 = vmatpush1.bf16.msra.mxu1 %v618_v62 }
 0x19b   : > { %v629_v6 = vpop.permute.xlu1 %628  ;;  %773 = vmatprep.subr.bf16.mxu1 %v621_v2 }
 0x19c   : > { %v632_v11 = vsel %vm630_vm7, %v2130_v43, %v629_v6  ;;  %v634_v8 = vsel %vm630_vm7, %v629_v6, %v2130_v43  ;;  %v1864_v6 = vld [vmem:[%s2532_s6 + $0x38] sm:$0xff]  }
 0x19d   : > { %v650_v16 = vmul.f32 %v641_v63, %v632_v11  ;;  %v651_v17 = vmul.f32 %v645_v40, %v634_v8 }
 0x19e   : > { %v691_v23 = vpop.permute.xlu0 %690  ;;  %774 = vmatpush1.bf16.msra.mxu1 %v620_v7 }
 0x19f   : > { %v661_v24 = vpop.permute.xlu1 %660  ;;  %v653_v43 = vpack.c.bf16 %v651_v17, %v649_v14  ;;  %v652_v25 = vpack.c.bf16 %v650_v16, %v648_v12  ;;  %v695_v35 = vsel %vm694_vm9, %v687_v5, %v691_v23  ;;  %v697_v36 = vsel %vm694_vm9, %v691_v23, %v687_v5  ;;  %v1863_v5 = vld [vmem:[%s2532_s6 + $0x78] sm:$0xff]  }
 0x1a0   : > { %v664_v28 = vsel %vm662_vm8, %v2134_v47, %v661_v24  ;;  %v666_v29 = vsel %vm662_vm8, %v661_v24, %v2134_v47  ;;  %v712_v54 = vmul.f32 %v705_v26, %v695_v35  ;;  %v713_v38 = vmul.f32 %v709_v27, %v697_v36  ;;  %v1870_v35 = vld [vmem:[%s2533_s7 + $0x18] sm:$0xff]   ;;  %v1871_v36 = vld [vmem:[%s2533_s7 + $0x20] sm:$0xff]  }
 0x1a1   : > { %v682_v32 = vmul.f32 %v673_v9, %v664_v28  ;;  %v683_v33 = vmul.f32 %v677_v10, %v666_v29  ;;  %775 = vmatprep.subr.bf16.mxu1 %v653_v43 }
 0x1a2   : > { %v719_v37 = vpop.permute.xlu0 %718  ;;  %776 = vmatpush1.bf16.msra.mxu1 %v652_v25 }
 0x1a3   : > { %v693_v41 = vpop.permute.xlu1 %692  ;;  %v685_v42 = vpack.c.bf16 %v683_v33, %v681_v31  ;;  %v684_v47 = vpack.c.bf16 %v682_v32, %v680_v30  ;;  %v1867_v31 = vld [vmem:[%s2533_s7] sm:$0xff]   ;;  %v1932_v32 = vmov 0.0   ;;  %v1868_v33 = vld [vmem:[%s2533_s7 + $0x8] sm:$0xff]  }
 0x1a4   : > { %v696_v44 = vsel %vm694_vm9, %v2144_v52, %v693_v41  ;;  %v698_v45 = vsel %vm694_vm9, %v693_v41, %v2144_v52  ;;  %v1873_v41 = vld [vmem:[%s2533_s7 + $0x30] sm:$0xff]  }
 0x1a5   : > { %v714_v55 = vmul.f32 %v705_v26, %v696_v44  ;;  %v715_v56 = vmul.f32 %v709_v27, %v698_v45  ;;  %777 = vmatprep.subr.bf16.mxu1 %v685_v42  ;;  %v1687_v42 = vld [vmem:[%s2536_s10] ss:$0 sm:$0xff] }
 0x1a6   : > { %v723_v57 = vpop.permute.xlu0 %722  ;;  %778 = vmatpush1.bf16.msra.mxu1 %v684_v47 }
 0x1a7   : > { %v727_v58 = vsel %vm726_vm10, %v719_v37, %v723_v57  ;;  %v729_v59 = vsel %vm726_vm10, %v723_v57, %v719_v37  ;;  %v725_v39 = vpop.permute.xlu1 %724  ;;  %v717_v51 = vpack.c.bf16 %v715_v56, %v713_v38  ;;  %v716_v52 = vpack.c.bf16 %v714_v55, %v712_v54  ;;  %v1872_v37 = vld [vmem:[%s2533_s7 + $0x28] sm:$0xff]  }
 0x1a8   : > { %v744_v61 = vmul.f32 %v737_v50, %v727_v58  ;;  %v745_v48 = vmul.f32 %v741_v53, %v729_v59  ;;  %v728_v49 = vsel %vm726_vm10, %v2198_v60, %v725_v39  ;;  %v730_v62 = vsel %vm726_vm10, %v725_v39, %v2198_v60  ;;  %v1862_v60 = vld [vmem:[%s2532_s6 + $0x30] sm:$0xff]   ;;  %v1689_v58 = vld [vmem:[%s2536_s10 + $0x2] ss:$0 sm:$0xff] }
 0x1a9   : > { %v746_v63 = vmul.f32 %v737_v50, %v728_v49  ;;  %v747_v40 = vmul.f32 %v741_v53, %v730_v62  ;;  %779 = vmatprep.subr.bf16.mxu1 %v717_v51  ;;  %1754 = vmatpush3.bf16.msra.mxu0 %v1862_v60  ;;  %v1688_v53 = vld [vmem:[%s2536_s10 + $0x1] ss:$0 sm:$0xff]  ;;  %v1691_v60 = vld [vmem:[%s2536_s10 + $0x5] ss:$0 sm:$0xff] }
 0x1aa   : > { %780 = vmatpush1.bf16.msra.mxu1 %v716_v52  ;;  %1755 = vmatprep.subr.bf16.mxu0 %v1863_v5 }
 0x1ab   : > { %v749_v1 = vpack.c.bf16 %v747_v40, %v745_v48  ;;  %v748_v2 = vpack.c.bf16 %v746_v63, %v744_v61  ;;  %v1690_v48 = vld [vmem:[%s2536_s10 + $0x3] ss:$0 sm:$0xff] }
 0x1ad   : > { %781 = vmatprep.subr.bf16.mxu1 %v749_v1  ;;  %1756 = vmatpush3.bf16.msra.mxu0 %v1864_v6 }
 0x1ae   : > { %782 = vmatpush1.bf16.msra.mxu1 %v748_v2  ;;  %1794 = vmatprep.subr.bf16.mxu0 %v1932_v32 }
 0x1af   : > { %1090 = vmatprep.subr.bf16.mxu1 %v1923_v0 }
 0x1b1   : > { %798 = vmatmul.mubr.bf16.vlgmr.msra.gmra.mrb[0].mxu1 %v1846_v3 }
 0x284   : > { %v799_v7 = vpop.f32.mrb[0].mxu1 }
 0x285   : > { %v808_v9 = vmax.f32 %v799_v7, 0.0  ;;  %v801_v10 = vpop.f32.mrb[1].mxu1 }
 0x286   : > { %v809_v11 = vmax.f32 %v801_v10, 0.0  ;;  %v803_v8 = vpop.f32.mrb[2].mxu1  ;;  %v1692_v10 = vld [vmem:[%s2536_s10 + $0x6] ss:$0 sm:$0xff] }
 0x287   : > { %v810_v12 = vmax.f32 %v803_v8, 0.0  ;;  %v805_v14 = vpop.f32.mrb[3].mxu1  ;;  %v1555_v17 = vadd.f32 %v808_v9, %v2014_v13 }
 0x288   : > { %v811_v16 = vmax.f32 %v805_v14, 0.0  ;;  %v1556_v22 = vadd.f32 %v809_v11, %v2016_v15 }
 0x289   : > { %v812_v20 = vpack.c.bf16 %v810_v12, %v808_v9  ;;  %v1557_v21 = vadd.f32 %v810_v12, %v2022_v18  ;;  %v2323_v18 = vld [vmem:[%s2529_s3] sm:$0xff] }
 0x28a   : > { %v813_v23 = vpack.c.bf16 %v811_v16, %v809_v11  ;;  %v1558_v24 = vadd.f32 %v811_v16, %v2048_v19  ;;  %v1696_v19 = vcombine.high %v2323_v18, %v2323_v18 }
 0x28b   : > { %v2284_v43 = vadd.f32 %v1557_v21, %v1555_v17  ;;  %v1693_v17 = vld [vmem:[%s2536_s10 + $0x7] ss:$0 sm:$0xff] }
 0x28c   : > { %v2286_v25 = vadd.f32 %v1558_v24, %v1556_v22  ;;  %974 = vmatprep.mubr.bf16.mxu0 %v813_v23  ;;  %1697 = vmatprep.mubr.msk.bf16.mxu1 %vm761_vm2, %v1696_v19  ;;  %v1694_v24 = vld [vmem:[%s2536_s10 + $0x8] ss:$0 sm:$0xff] }
 0x28d   : > { %975 = vmatmul.mubr.bf16.vlgmr.msra.gmra.mrb[4].mxu0 %v812_v20  ;;  %v1875_v19 = vld [vmem:[%s2530_s4] ss:$8 sps:$4 sm:$0xff]  }
 0x28e   : > { %1795 = vmatpush3.bf16.msra.mxu0 %v1867_v31  ;;  %1810 = vmatprep.mubr.msk.bf16.mxu0 %vm1933_vm11, %v1932_v32  ;;  %v1878_v31 = vld [vmem:[%s2530_s4 + $0x10] ss:$8 sps:$4 sm:$0xff]  }
 0x28f   : > { %1796 = vmatprep.subr.bf16.mxu0 %v1932_v32 }
 0x292   : > { %1797 = vmatpush3.bf16.msra.mxu0 %v1868_v33  ;;  %v1883_v33 = vld [vmem:[%s2530_s4 + $0x24] ss:$8 sps:$4 sm:$0xff]  }
 0x293   : > { %1798 = vmatprep.subr.bf16.mxu0 %v1932_v32 }
 0x296   : > { %1799 = vmatpush3.bf16.msra.mxu0 %v1869_v34  ;;  %v1881_v34 = vld [vmem:[%s2530_s4 + $0x20] ss:$8 sps:$4 sm:$0xff]  }
 0x297   : > { %1800 = vmatprep.subr.bf16.mxu0 %v1932_v32 }
 0x29a   : > { %1801 = vmatpush3.bf16.msra.mxu0 %v1870_v35  ;;  %v1886_v35 = vld [vmem:[%s2530_s4 + $0x34] ss:$8 sps:$4 sm:$0xff]  }
 0x29b   : > { %1802 = vmatprep.subr.bf16.mxu0 %v1932_v32 }
 0x29e   : > { %1803 = vmatpush3.bf16.msra.mxu0 %v1871_v36  ;;  %v1884_v36 = vld [vmem:[%s2530_s4 + $0x30] ss:$8 sps:$4 sm:$0xff]  }
 0x29f   : > { %1804 = vmatprep.subr.bf16.mxu0 %v1932_v32 }
 0x2a2   : > { %1805 = vmatpush3.bf16.msra.mxu0 %v1872_v37 }
 0x2a3   : > { %1806 = vmatprep.subr.bf16.mxu0 %v1932_v32 }
 0x2a6   : > { %1807 = vmatpush3.bf16.msra.mxu0 %v1873_v41 }
 0x2a7   : > { %1808 = vmatprep.subr.bf16.mxu0 %v1932_v32 }
 0x360   : > { %v1757_v26 = vpop.f32.mrb[4].mxu0 }
 0x361   : > { %v1758_v27 = vpop.f32.mrb[5].mxu0 }
 0x362   : > { %v2288_v28 = vadd.f32 %v1758_v27, %v1757_v26  ;;  %v1760_v29 = vpop.f32.mrb[6].mxu0 }
 0x363   : > { %v1761_v13 = vpop.f32.mrb[7].mxu0 }
 0x364   : > { %v2290_v30 = vadd.f32 %v1761_v13, %v1760_v29  ;;  %983 = vrot.lane.b32.xlu0 %v2288_v28, %s1924_s25 }
 0x366   : > { %985 = vrot.lane.b32.xlu1 %v2290_v30, %s1924_s25  ;;  %v1031_v15 = vpack.c.bf16 %v2290_v30, %v2288_v28 }
 0x368   : > { %995 = vrot.lane.b32.xlu0 %v2288_v28, %s1925_s26 }
 0x36a   : > { %997 = vrot.lane.b32.xlu1 %v2290_v30, %s1925_s26  ;;  %s382_s26 = scalar_lea.vmem %s2537_s11, %s2542_s18 }
 0x36c   : > { %1007 = vrot.lane.b32.xlu0 %v2288_v28, %s1926_s27 }
 0x36e   : > { %1009 = vrot.lane.b32.xlu1 %v2290_v30, %s1926_s27  ;;  %s2540_s27 = smov 111  }
 0x370   : > { %1019 = vrot.lane.b32.xlu0 %v2288_v28, %s1927_s28 }
 0x372   : > { %1021 = vrot.lane.b32.xlu1 %v2290_v30, %s1927_s28 }
 0x374   : > { %1032 = vrot.lane.b32.xlu0 %v2288_v28, %s1928_s29 }
 0x376   : > { %1034 = vrot.lane.b32.xlu1 %v2290_v30, %s1928_s29 }
 0x378   : > { %1044 = vrot.lane.b32.xlu0 %v2288_v28, %s1929_s30 }
 0x37a   : > { %1046 = vrot.lane.b32.xlu1 %v2290_v30, %s1929_s30 }
 0x37c   : > { %1056 = vrot.lane.b32.xlu0 %v2288_v28, %s1930_s12 }
 0x37e   : > { %1058 = vrot.lane.b32.xlu1 %v2290_v30, %s1930_s12 }
 0x380   : > { %1068 = vrot.lane.b32.xlu0 %v2288_v28, %s2540_s27 }
 0x382   : > { %1070 = vrot.lane.b32.xlu1 %v2290_v30, %s2540_s27  ;;  %v1695_v30 = vcombine.low %v2323_v18, %v2323_v18  ;;  %v1877_v18 = vld [vmem:[%s2530_s4 + $0x4] ss:$8 sps:$4 sm:$0xff]  }
 0x3d6   : > { %v984_v47 = vpop.permute.xlu0 %983 }
 0x3d7   : > { %v992_v45 = vmul.f32 %v1687_v42, %v984_v47 }
 0x3d8   : > { %v986_v44 = vpop.permute.xlu1 %985 }
 0x3d9   : > { %v993_v50 = vmul.f32 %v1687_v42, %v986_v44 }
 0x3da   : > { %v996_v54 = vpop.permute.xlu0 %995 }
 0x3db   : > { %v994_v38 = vpack.c.bf16 %v993_v50, %v992_v45  ;;  %v1004_v56 = vmul.f32 %v1688_v53, %v996_v54  ;;  %v1889_v50 = vld [vmem:[%s2530_s4 + $0x44] ss:$8 sps:$4 sm:$0xff]   ;;  %v1892_v54 = vld [vmem:[%s2530_s4 + $0x54] ss:$8 sps:$4 sm:$0xff]  }
 0x3dc   : > { %v998_v55 = vpop.permute.xlu1 %997 }
 0x3dd   : > { %v1005_v57 = vmul.f32 %v1688_v53, %v998_v55  ;;  %1091 = vmatpush1.bf16.msra.mxu1 %v994_v38  ;;  %v1887_v53 = vld [vmem:[%s2530_s4 + $0x40] ss:$8 sps:$4 sm:$0xff]   ;;  %v1890_v38 = vld [vmem:[%s2530_s4 + $0x50] ss:$8 sps:$4 sm:$0xff]   ;;  %v1895_v55 = vld [vmem:[%s2530_s4 + $0x64] ss:$8 sps:$4 sm:$0xff]  }
 0x3de   : > { %v1008_v59 = vpop.permute.xlu0 %1007  ;;  %1092 = vmatprep.subr.bf16.mxu1 %v1923_v0 }
 0x3df   : > { %v1006_v39 = vpack.c.bf16 %v1005_v57, %v1004_v56  ;;  %v1016_v52 = vmul.f32 %v1689_v58, %v1008_v59  ;;  %v1893_v56 = vld [vmem:[%s2530_s4 + $0x60] ss:$8 sps:$4 sm:$0xff]   ;;  %v1898_v57 = vld [vmem:[%s2530_s4 + $0x74] ss:$8 sps:$4 sm:$0xff]  }
 0x3e0   : > { %v1010_v51 = vpop.permute.xlu1 %1009  ;;  %v1899_v59 = vld [vmem:[%s2531_s5 + $0x40] sm:$0xff]  }
 0x3e1   : > { %v1017_v61 = vmul.f32 %v1689_v58, %v1010_v51  ;;  %1093 = vmatpush1.bf16.msra.mxu1 %v1006_v39  ;;  %v1896_v58 = vld [vmem:[%s2530_s4 + $0x70] ss:$8 sps:$4 sm:$0xff]   ;;  %v1900_v39 = vld [vmem:[%s2531_s5] sm:$0xff]   ;;  %v1901_v51 = vld [vmem:[%s2531_s5 + $0x48] sm:$0xff]  }
 0x3e2   : > { %v1020_v49 = vpop.permute.xlu0 %1019  ;;  %1094 = vmatprep.subr.bf16.mxu1 %v1923_v0 }
 0x3e3   : > { %v1018_v62 = vpack.c.bf16 %v1017_v61, %v1016_v52  ;;  %v1028_v40 = vmul.f32 %v1690_v48, %v1020_v49  ;;  %v1902_v52 = vld [vmem:[%s2531_s5 + $0x8] sm:$0xff]   ;;  %v1903_v61 = vld [vmem:[%s2531_s5 + $0x50] sm:$0xff]   ;;  %v1905_v49 = vld [vmem:[%s2531_s5 + $0x58] sm:$0xff]  }
 0x3e4   : > { %v1022_v63 = vpop.permute.xlu1 %1021 }
 0x3e5   : > { %v1029_v1 = vmul.f32 %v1690_v48, %v1022_v63  ;;  %1095 = vmatpush1.bf16.msra.mxu1 %v1018_v62  ;;  %v1904_v48 = vld [vmem:[%s2531_s5 + $0x10] sm:$0xff]   ;;  %v1906_v62 = vld [vmem:[%s2531_s5 + $0x18] sm:$0xff]   ;;  %v1907_v63 = vld [vmem:[%s2531_s5 + $0x60] sm:$0xff]  }
 0x3e6   : > { %v1033_v2 = vpop.permute.xlu0 %1032  ;;  %1096 = vmatprep.subr.bf16.mxu1 %v1923_v0 }
 0x3e7   : > { %v1030_v3 = vpack.c.bf16 %v1029_v1, %v1028_v40  ;;  %v1041_v9 = vmul.f32 %v1691_v60, %v1033_v2  ;;  %v1908_v40 = vld [vmem:[%s2531_s5 + $0x20] sm:$0xff]   ;;  %v1909_v1 = vld [vmem:[%s2531_s5 + $0x68] sm:$0xff]  }
 0x3e8   : > { %v1035_v4 = vpop.permute.xlu1 %1034  ;;  %v1910_v2 = vld [vmem:[%s2531_s5 + $0x28] sm:$0xff]  }
 0x3e9   : > { %1097 = vmatpush1.bf16.msra.mxu1 %v1030_v3  ;;  %v1042_v6 = vmul.f32 %v1691_v60, %v1035_v4  ;;  %v1911_v3 = vld [vmem:[%s2531_s5 + $0x70] sm:$0xff]   ;;  %v1236_v4 = vld [vmem:[%s2534_s8] sm:$0xff] }
 0x3ea   : > { %v1045_v5 = vpop.permute.xlu0 %1044  ;;  %1098 = vmatprep.subr.bf16.mxu1 %v1923_v0 }
 0x3eb   : > { %v1043_v11 = vpack.c.bf16 %v1042_v6, %v1041_v9  ;;  %v1053_v16 = vmul.f32 %v1692_v10, %v1045_v5 }
 0x3ec   : > { %v1047_v7 = vpop.permute.xlu1 %1046 }
 0x3ed   : > { %1099 = vmatpush1.bf16.msra.mxu1 %v1031_v15  ;;  %v1054_v8 = vmul.f32 %v1692_v10, %v1047_v7  ;;  %v1874_v15 = vld [vmem:[%s2533_s7 + $0x38] sm:$0xff]  }
 0x3ee   : > { %1100 = vmatprep.subr.bf16.mxu1 %v1923_v0  ;;  %v1057_v12 = vpop.permute.xlu0 %1056  ;;  %1809 = vmatpush3.bf16.msra.mxu0 %v1874_v15 }
 0x3ef   : > { %v1055_v20 = vpack.c.bf16 %v1054_v8, %v1053_v16  ;;  %v1065_v23 = vmul.f32 %v1693_v17, %v1057_v12  ;;  %1772 = vmatprep.subr.bf16.mxu0 %v1899_v59 }
 0x3f0   : > { %v1059_v14 = vpop.permute.xlu1 %1058 }
 0x3f1   : > { %1101 = vmatpush1.bf16.msra.mxu1 %v1043_v11  ;;  %v1066_v21 = vmul.f32 %v1693_v17, %v1059_v14 }
 0x3f2   : > { %1102 = vmatprep.subr.bf16.mxu1 %v1923_v0  ;;  %v1069_v26 = vpop.permute.xlu0 %1068 }
 0x3f3   : > { %v1067_v27 = vpack.c.bf16 %v1066_v21, %v1065_v23  ;;  %v1077_v29 = vmul.f32 %v1694_v24, %v1069_v26  ;;  %v1913_v21 = vld [vmem:[%s2531_s5 + $0x78] sm:$0xff]   ;;  %v1560_v23 = vrot.slane %v2284_v43, 4 }
 0x3f4   : > { %v1071_v22 = vpop.permute.xlu1 %1070 }
 0x3f5   : > { %1103 = vmatpush1.bf16.msra.mxu1 %v1055_v20  ;;  %v1078_v28 = vmul.f32 %v1694_v24, %v1071_v22  ;;  %v1912_v20 = vld [vmem:[%s2531_s5 + $0x30] sm:$0xff]   ;;  %v1914_v22 = vld [vmem:[%s2531_s5 + $0x38] sm:$0xff]   ;;  %v1567_v24 = vrot.slane %v2286_v25, 4  ;;  %v1561_v26 = vadd.f32 %v1560_v23, %v2284_v43 }
 0x3f6   : > { %1104 = vmatprep.subr.bf16.mxu1 %v1923_v0 }
 0x3f7   : > { %v1079_v13 = vpack.c.bf16 %v1078_v28, %v1077_v29  ;;  %v1562_v28 = vrot.slane %v1561_v26, 2 }
 0x3f9   : > { %1105 = vmatpush1.bf16.msra.mxu1 %v1067_v27  ;;  %v1568_v27 = vadd.f32 %v1567_v24, %v2286_v25 }
 0x3fa   : > { %1106 = vmatprep.subr.bf16.mxu1 %v1923_v0 }
 0x3fb   : > { %v1569_v29 = vrot.slane %v1568_v27, 2 }
 0x3fd   : > { %1107 = vmatpush1.bf16.msra.mxu1 %v1079_v13  ;;  %v1563_v13 = vadd.f32 %v1562_v28, %v1561_v26 }
 0x3fe   : > { %1341 = vmatprep.subr.bf16.mxu1 %v1877_v18 }
 0x3ff   : > { %v1564_v15 = vrot.slane %v1563_v13, 1 }
 0x400   : > { %1123 = vmatmul.mubr.bf16.vlgmr.msra.gmra.mrb[4].mxu1 %v1695_v30  ;;  %v1570_v30 = vadd.f32 %v1569_v29, %v1568_v27 }
 0x401   : > { %1373 = vmatprep.mubr.bf16.mxu1 %v1923_v0  ;;  %v1880_v0 = vld [vmem:[%s2530_s4 + $0x14] ss:$8 sps:$4 sm:$0xff]   ;;  %1342 = vmatpush1.bf16.msra.mxu1 %v1875_v19 }
 0x402   : > { %1343 = vmatprep.subr.bf16.mxu1 %v1880_v0  ;;  %v1571_v19 = vrot.slane %v1570_v30, 1 }
 0x405   : > { %1344 = vmatpush1.bf16.msra.mxu1 %v1878_v31  ;;  %v1565_v31 = vadd.f32 %v1564_v15, %v1563_v13 }
 0x406   : > { %1345 = vmatprep.subr.bf16.mxu1 %v1883_v33 }
 0x409   : > { %1346 = vmatpush1.bf16.msra.mxu1 %v1881_v34 }
 0x40a   : > { %1347 = vmatprep.subr.bf16.mxu1 %v1886_v35  ;;  %v1572_v35 = vadd.f32 %v1571_v19, %v1570_v30 }
 0x40d   : > { %1348 = vmatpush1.bf16.msra.mxu1 %v1884_v36 }
 0x40e   : > { %1349 = vmatprep.subr.bf16.mxu1 %v1889_v50 }
 0x411   : > { %1350 = vmatpush1.bf16.msra.mxu1 %v1887_v53 }
 0x412   : > { %1351 = vmatprep.subr.bf16.mxu1 %v1892_v54 }
 0x415   : > { %1352 = vmatpush1.bf16.msra.mxu1 %v1890_v38 }
 0x416   : > { %1353 = vmatprep.subr.bf16.mxu1 %v1895_v55 }
 0x419   : > { %1354 = vmatpush1.bf16.msra.mxu1 %v1893_v56 }
 0x41a   : > { %1355 = vmatprep.subr.bf16.mxu1 %v1898_v57 }
 0x41d   : > { %1356 = vmatpush1.bf16.msra.mxu1 %v1896_v58 }
 0x4d3   : > { %v1124_v37 = vpop.f32.mrb[4].mxu1 }
 0x4d4   : > { %v2429_v41 = vmax.f32 %v1124_v37, 0.0  ;;  %v1126_v42 = vpop.f32.mrb[5].mxu1 }
 0x4d5   : > { %v1127_v47 = vpop.f32.mrb[6].mxu1 }
 0x4d6   : > { %v1131_v44 = vpack.c.bf16 %v2429_v41, %v2429_v41  ;;  %v1128_v45 = vpop.f32.mrb[7].mxu1  ;;  %v1575_v53 = vrot.slane %v2429_v41, 4 }
 0x4d8   : > { %1811 = vmatmul.mubr.bf16.vlgmr.msra.gmra.mrb[8].mxu0 %v1131_v44  ;;  %v1576_v54 = vadd.f32 %v1575_v53, %v2429_v41  ;;  %v1738_v41 = vsel %vm1591_vm12, 1.0, %v1932_v32 }
 0x4d9   : > { %1773 = vmatpush3.bf16.msra.mxu0 %v1900_v39 }
 0x4da   : > { %1774 = vmatprep.subr.bf16.mxu0 %v1901_v51  ;;  %v1577_v38 = vrot.slane %v1576_v54, 2 }
 0x4dc   : > { %v1578_v55 = vadd.f32 %v1577_v38, %v1576_v54 }
 0x4dd   : > { %1775 = vmatpush3.bf16.msra.mxu0 %v1902_v52 }
 0x4de   : > { %1776 = vmatprep.subr.bf16.mxu0 %v1903_v61  ;;  %v1579_v57 = vrot.slane %v1578_v55, 1 }
 0x4e0   : > { %v1580_v61 = vadd.f32 %v1579_v57, %v1578_v55 }
 0x4e1   : > { %1777 = vmatpush3.bf16.msra.mxu0 %v1904_v48 }
 0x4e2   : > { %1778 = vmatprep.subr.bf16.mxu0 %v1905_v49 }
 0x4e5   : > { %1779 = vmatpush3.bf16.msra.mxu0 %v1906_v62 }
 0x4e6   : > { %1780 = vmatprep.subr.bf16.mxu0 %v1907_v63 }
 0x4e9   : > { %1781 = vmatpush3.bf16.msra.mxu0 %v1908_v40 }
 0x4ea   : > { %1782 = vmatprep.subr.bf16.mxu0 %v1909_v1 }
 0x4ed   : > { %1783 = vmatpush3.bf16.msra.mxu0 %v1910_v2 }
 0x4ee   : > { %1784 = vmatprep.subr.bf16.mxu0 %v1911_v3 }
 0x4f1   : > { %1785 = vmatpush3.bf16.msra.mxu0 %v1912_v20 }
 0x4f2   : > { %1786 = vmatprep.subr.bf16.mxu0 %v1913_v21 }
 0x4f5   : > { %1787 = vmatpush3.bf16.msra.mxu0 %v1914_v22 }
 0x5ab   : > { %v1230_v60 = vpop.f32.mrb[8].mxu0 }
 0x5ac   : > { %v1237_v5 = vmul.f32 %v1236_v4, %v1230_v60  ;;  %v1812_v6 = vpop.f32.mrb[9].mxu0 }
 0x5ad   : > { %v1233_v7 = vpop.f32.mrb[10].mxu0 }
 0x5ae   : > { %v1238_v9 = vrot.slane %v1237_v5, 4  ;;  %v1813_v10 = vpop.f32.mrb[11].mxu0 }
 0x5b0   : > { %v1239_v11 = vadd.f32 %v1238_v9, %v1237_v5 }
 0x5b2   : > { %v1240_v8 = vrot.slane %v1239_v11, 2 }
 0x5b4   : > { %v1241_v12 = vadd.f32 %v1240_v8, %v1239_v11 }
 0x5b6   : > { %v1242_v14 = vrot.slane %v1241_v12, 1 }
 0x5b8   : > { %v1243_v16 = vadd.f32 %v1242_v14, %v1241_v12 }
 0x5ba   : > { %v1244_v17 = vpack.c.bf16 %v1243_v16, %v1243_v16 }
 0x5bc   : > { %1374 = vmatmul.mubr.bf16.vlgmr.msra.gmra.mrb[8].mxu1 %v1244_v17 }
 0x68f   : > { %v1375_v18 = vpop.f32.mrb[8].mxu1 }
 0x690   : > { %v1382_v0 = vmax.f32 %v1375_v18, 0.0  ;;  %v1377_v33 = vpop.f32.mrb[9].mxu1 }
 0x691   : > { %v1383_v34 = vmax.f32 %v1377_v33, 0.0  ;;  %v1379_v36 = vpop.f32.mrb[10].mxu1 }
 0x692   : > { %v1573_v37 = vadd.f32 %v1565_v31, %v1382_v0  ;;  %v1380_v42 = vpop.f32.mrb[11].mxu1  ;;  %v1384_v43 = vpack.c.bf16 %v1382_v0, %v1382_v0 }
 0x693   : > { %v1385_v47 = vpack.c.bf16 %v1383_v34, %v1383_v34  ;;  %v1574_v44 = vadd.f32 %v1572_v35, %v1383_v34 }
 0x694   : > { %v1582_v25 = vsel %vm437_vm0, %v1573_v37, 0.0 }
 0x695   : > { %1546 = vmatprep.mubr.bf16.mxu0 %v1385_v47  ;;  %v1583_v45 = vsel %vm437_vm0, %v1574_v44, 0.0 }
 0x696   : > { %1547 = vmatmul.mubr.bf16.vlgmr.msra.gmra.mrb[12].mxu0 %v1384_v43  ;;  %v1584_v50 = vadd.f32 %v1583_v45, %v1582_v25 }
 0x698   : > { %1585 = vadd.xlane.f32.xlu0 %v1584_v50 }
 0x725   : > { %v1586_v62 = vpop.xlane.xlu0 %1585 }
 0x769   : > { %v1788_v56 = vpop.f32.mrb[12].mxu0 }
 0x76a   : > { %v1789_v58 = vpop.f32.mrb[13].mxu0 }
 0x76b   : > { %v1790_v59 = vadd.f32 %v1789_v58, %v1788_v56  ;;  %v1791_v39 = vpop.f32.mrb[14].mxu0 }
 0x76c   : > { %v1792_v51 = vpop.f32.mrb[15].mxu0 }
 0x76d   : > { %v1554_v52 = vmax.f32 %v1790_v59, 0.0 }
 0x76f   : > { %v1581_v48 = vadd.f32 %v1580_v61, %v1554_v52 }
 0x771   : > { %v1587_v49 = vsel %vm437_vm0, %v1581_v48, 0.0 }
 0x772   : > { %1588 = vadd.xlane.f32.xlu1 %v1587_v49 }
 0x7ff   : > { %v1589_v63 = vpop.xlane.xlu1 %1588 }
 0x800   : > { %v1590_v40 = vadd.f32 %v1589_v63, %v1586_v62 }
 0x802   : > { %v1594_v1 = vmul.f32 %v1738_v41, %v1590_v40 }
 0x804   : > { %v1595_v2 = vadd.f32 %v1594_v1, %v1554_v52 }
 0x806   : > { %1596 = vst [vmem:[%s382_s26] sm:$0x1] %v1595_v2 }
 0x807 PF: > { %s21_s17 = sadd.s32 1, %s1921_s17  }
 0x808   : > { %p18_p4 = scmp.ge.s32.totalorder %s21_s17, 4  }
 0x80a   :  { %20 = sbr.rel (!%p18_p4) target bundleno = 1 (0x1), region = 101 }

</bundles_post_ra>
